<compile_context>
chip_gen: v6e
topology: v6e:2x2x1
jax: 0.10.0
libtpu: 0.0.40
codegen_flags: <defaults>
</compile_context>

<pallas_src>
import jax
import jax.numpy as jnp
from jax.experimental import pallas as pl
from jax.experimental.pallas import tpu as pltpu

KSIZE = 3      # kernel_size
PAD = 1        # reflect padding
LANE = 128     # TPU lane width
SUBLANE = 8    # TPU sublane width


def _round_up(x, m):
    return ((x + m - 1) // m) * m


def conv_relu_kernel(a_ref, h_ref, w_ref, o_ref):
    """One (batch, L-tile) grid step.

    a_ref: (1, T, Cin)    rows [i*T, i*T+T) of the reflect-padded input (this tile)
    h_ref: (1, 8, Cin)    rows [i*T+T, i*T+T+8) of the same array (only first 2 rows used)
    w_ref: (3*Cin, Cout)  tap-major fused conv weight
    o_ref: (1, T, Cout)   output tile
    """
    T = a_ref.shape[1]
    xa = a_ref[0]                               # (T, Cin)
    xh = h_ref[0]                               # (8, Cin) halo block (sublane-aligned)
    xw = jnp.concatenate([xa, xh], axis=0)      # (T+8, Cin), aligned sublane concat
    # im2col for K=3: lane-concat of the three shifted views -> one big MXU matmul.
    x3 = jnp.concatenate([xw[0:T], xw[1:T + 1], xw[2:T + 2]], axis=-1)   # (T, 3*Cin)
    y = jnp.dot(x3, w_ref[...], preferred_element_type=jnp.float32)     # (T, Cout) f32
    o_ref[0] = jnp.maximum(y, 0.0).astype(o_ref.dtype)


def conv_block_forward(x_ncl, weight_oik, *, tile_l=512):
    """x_ncl: (N, C_in, L) as in PyTorch. weight_oik: (C_out, C_in, K) = nn.Conv1d.weight.
    Returns (N, C_out, L). Requires K == 3, stride == 1, L >= 2 (reflect padding)."""
    N, C_in, L = x_ncl.shape
    C_out, C_in_w, K = weight_oik.shape
    assert K == KSIZE and C_in_w == C_in and L >= 2
    dtype = x_ncl.dtype
    itemsize = jnp.dtype(dtype).itemsize

    # Lane-dense channel padding (zeros contribute nothing; sliced off at the end).
    C_in_p = _round_up(C_in, LANE)
    C_out_p = _round_up(C_out, LANE)

    # L tiling: T a multiple of 8.  NOTE: default 512 fits comfortably on v5e/v6e (128 MiB
    # VMEM) and v7x (64 MiB); for very large channel counts on v7x, halve tile_l.
    T = _round_up(min(tile_l, _round_up(L, SUBLANE)), SUBLANE)
    num_tiles = (L + T - 1) // T
    rows_pad = num_tiles * T + SUBLANE   # main tiles + one 8-row halo block past the end

    # ---- glue: layout + padding (fused into one pass by XLA under jit). ----
    # TODO(synk): in a full model, fold the NCL->NLC transpose into the producer layer and
    # do the reflect halo in-kernel to remove this extra HBM round trip entirely.
    x_nlc = jnp.transpose(x_ncl, (0, 2, 1))                                # (N, L, C_in)
    x_pad = jnp.pad(x_nlc, ((0, 0), (PAD, PAD), (0, 0)), mode="reflect")   # (N, L+2, C_in)
    x_pad = jnp.pad(x_pad, ((0, 0), (0, rows_pad - (L + 2 * PAD)), (0, C_in_p - C_in)))

    # Fused tap-major weight: (C_out, C_in, K) -> (K, C_in, C_out) -> pad -> (3*C_in_p, C_out_p)
    w_kio = jnp.transpose(weight_oik, (2, 1, 0)).astype(dtype)
    w_kio = jnp.pad(w_kio, ((0, 0), (0, C_in_p - C_in), (0, C_out_p - C_out)))
    w3 = w_kio.reshape(KSIZE * C_in_p, C_out_p)

    # VMEM budget: double-buffered blocks + in-kernel temporaries, with 2x headroom.
    vmem_est = (2 * T * C_in_p * itemsize            # main input (double-buffered)
                + 2 * SUBLANE * C_in_p * itemsize    # halo input
                + 2 * KSIZE * C_in_p * C_out_p * itemsize   # resident weight
                + 2 * T * C_out_p * itemsize         # output
                + T * (C_in_p + KSIZE * C_in_p + C_out_p) * 4)  # xw, x3, f32 result temps
    vmem_limit = int(min(64 * 1024 * 1024, max(32 * 1024 * 1024, 2 * vmem_est)))

    cost = pl.CostEstimate(
        flops=2 * N * num_tiles * T * (KSIZE * C_in_p) * C_out_p,
        transcendentals=0,
        bytes_accessed=(x_pad.size + w3.size + N * num_tiles * T * C_out_p) * itemsize,
    )

    halo_blocks_per_tile = T // SUBLANE

    def main_map(n, i):
        return (n, i, 0)

    def halo_map(n, i):
        return (n, (i + 1) * halo_blocks_per_tile, 0)

    def weight_map(n, i):
        return (0, 0)   # constant -> weight DMA'd once and kept resident in VMEM

    out_p = pl.pallas_call(
        conv_relu_kernel,
        out_shape=jax.ShapeDtypeStruct((N, num_tiles * T, C_out_p), dtype),
        grid_spec=pltpu.PrefetchScalarGridSpec(
            num_scalar_prefetch=0,
            grid=(N, num_tiles),
            in_specs=[
                pl.BlockSpec((1, T, C_in_p), main_map),
                pl.BlockSpec((1, SUBLANE, C_in_p), halo_map),
                pl.BlockSpec((KSIZE * C_in_p, C_out_p), weight_map),
            ],
            out_specs=pl.BlockSpec((1, T, C_out_p), main_map),
        ),
        compiler_params=pltpu.CompilerParams(
            dimension_semantics=("parallel", "parallel"),
            vmem_limit_bytes=vmem_limit,
        ),
        cost_estimate=cost,
    )(x_pad, x_pad, w3)

    # Drop L / channel padding, back to PyTorch NCL layout.
    return jnp.transpose(out_p[:, :L, :C_out], (0, 2, 1))


if __name__ == "__main__":
    key = jax.random.PRNGKey(0)
    k_x, k_w = jax.random.split(key)

    N, C_in, C_out, L = 2, 4, 8, 16
    x = jax.random.normal(k_x, (N, C_in, L), dtype=jnp.float32)
    # Deterministic Conv1d weight, PyTorch shape (out_channels, in_channels, kernel_size).
    weight = jax.random.normal(k_w, (C_out, C_in, KSIZE), dtype=jnp.float32) * 0.1

    fwd = jax.jit(conv_block_forward)
    out = jax.block_until_ready(fwd(x, weight))

    # Pure-JAX reference (reflect pad + tap-wise matmul + ReLU; dropout inactive in forward()).
    x_nlc = jnp.transpose(x, (0, 2, 1))
    x_ref_pad = jnp.pad(x_nlc, ((0, 0), (PAD, PAD), (0, 0)), mode="reflect")
    w_kio = jnp.transpose(weight, (2, 1, 0))
    ref = jnp.zeros((N, L, C_out), jnp.float32)
    for k in range(KSIZE):
        ref = ref + jnp.einsum("nlc,co->nlo", x_ref_pad[:, k:k + L, :], w_kio[k])
    ref = jnp.transpose(jnp.maximum(ref, 0.0), (0, 2, 1))

    assert out.shape == (N, C_out, L)
    assert jnp.allclose(out, ref, atol=1e-4, rtol=1e-4), "mismatch vs reference"
    print("KERNEL_OK")
</pallas_src>

<mosaic_0001>
module attributes {stable_mosaic.version = 11 : i64} {
  func.func @conv_relu_kernel(%arg0: i32, %arg1: i32, %arg2: memref<1x16x128xf32, #tpu.memory_space<vmem>>, %arg3: memref<1x8x128xf32, #tpu.memory_space<vmem>>, %arg4: memref<384x128xf32, #tpu.memory_space<vmem>>, %arg5: memref<1x16x128xf32, #tpu.memory_space<vmem>>) attributes {dimension_semantics = [#tpu.dimension_semantics<parallel>, #tpu.dimension_semantics<parallel>], iteration_bounds = array<i64: 2, 1>, scalar_prefetch = 0 : i64, scratch_operands = 0 : i64, tpu.core_type = #tpu.core_type<tc>, window_params = [{transform_indices = @transform_0, window_bounds = array<i64: 1, 16, 128>}, {transform_indices = @transform_1, window_bounds = array<i64: 1, 8, 128>}, {pipeline_mode = #tpu.pipeline_mode<synchronous>, transform_indices = @transform_2, window_bounds = array<i64: 384, 128>}, {transform_indices = @transform_3, window_bounds = array<i64: 1, 16, 128>}]} {
    %c0 = arith.constant 0 : index
    %c0_0 = arith.constant 0 : index
    %c0_1 = arith.constant 0 : index
    %0 = vector.load %arg2[%c0, %c0_0, %c0_1] : memref<1x16x128xf32, #tpu.memory_space<vmem>>, vector<1x16x128xf32>
    %1 = vector.shape_cast %0 : vector<1x16x128xf32> to vector<16x128xf32>
    %c0_2 = arith.constant 0 : index
    %c0_3 = arith.constant 0 : index
    %c0_4 = arith.constant 0 : index
    %2 = vector.load %arg3[%c0_2, %c0_3, %c0_4] : memref<1x8x128xf32, #tpu.memory_space<vmem>>, vector<1x8x128xf32>
    %3 = vector.shape_cast %2 : vector<1x8x128xf32> to vector<8x128xf32>
    %4 = tpu.concatenate %1, %3 in 0 : vector<16x128xf32>, vector<8x128xf32> -> vector<24x128xf32>
    %5 = vector.extract_strided_slice %4 {offsets = [0, 0], sizes = [16, 128], strides = [1, 1]} : vector<24x128xf32> to vector<16x128xf32>
    %6 = vector.extract_strided_slice %4 {offsets = [1, 0], sizes = [16, 128], strides = [1, 1]} : vector<24x128xf32> to vector<16x128xf32>
    %7 = vector.extract_strided_slice %4 {offsets = [2, 0], sizes = [16, 128], strides = [1, 1]} : vector<24x128xf32> to vector<16x128xf32>
    %8 = tpu.concatenate %5, %6, %7 in 1 : vector<16x128xf32>, vector<16x128xf32>, vector<16x128xf32> -> vector<16x384xf32>
    %c0_5 = arith.constant 0 : index
    %c0_6 = arith.constant 0 : index
    %9 = vector.load %arg4[%c0_5, %c0_6] : memref<384x128xf32, #tpu.memory_space<vmem>>, vector<384x128xf32>
    %cst = arith.constant dense<0.000000e+00> : vector<16x128xf32>
    %10 = tpu.matmul %8, %9, %cst {dimension_numbers = #tpu.dot_dimension_numbers<[1], [0], [0], [1], [0, 0, 1, 1], [], []>} : vector<16x384xf32>, vector<384x128xf32>, vector<16x128xf32> -> vector<16x128xf32>
    %cst_7 = arith.constant 0.000000e+00 : f32
    %11 = vector.broadcast %cst_7 : f32 to vector<16x128xf32>
    %12 = arith.maximumf %10, %11 : vector<16x128xf32>
    %c0_8 = arith.constant 0 : index
    %c0_9 = arith.constant 0 : index
    %c0_10 = arith.constant 0 : index
    %13 = vector.load %arg5[%c0_8, %c0_9, %c0_10] : memref<1x16x128xf32, #tpu.memory_space<vmem>>, vector<1x16x128xf32>
    %14 = vector.shape_cast %13 : vector<1x16x128xf32> to vector<16x128xf32>
    %15 = vector.shape_cast %12 : vector<16x128xf32> to vector<1x16x128xf32>
    tpu.vector_store %arg5[%c0_8, %c0_9, %c0_10], %15 {strides = array<i32>} : memref<1x16x128xf32, #tpu.memory_space<vmem>>, vector<1x16x128xf32>,
    return
  }
  func.func @transform_0(%arg0: i32, %arg1: i32) -> (i32, i32, i32) {
    %c0_i32 = arith.constant 0 : i32
    %c0_i32_0 = arith.constant 0 : i32
    return %arg0, %arg1, %c0_i32 : i32, i32, i32
  }
  func.func @transform_1(%arg0: i32, %arg1: i32) -> (i32, i32, i32) {
    %c1_i32 = arith.constant 1 : i32
    %0 = arith.addi %arg1, %c1_i32 : i32
    %c2_i32 = arith.constant 2 : i32
    %1 = arith.muli %0, %c2_i32 : i32
    %c0_i32 = arith.constant 0 : i32
    %c0_i32_0 = arith.constant 0 : i32
    return %arg0, %1, %c0_i32 : i32, i32, i32
  }
  func.func @transform_2(%arg0: i32, %arg1: i32) -> (i32, i32) {
    %c0_i32 = arith.constant 0 : i32
    %c0_i32_0 = arith.constant 0 : i32
    %c0_i32_1 = arith.constant 0 : i32
    return %c0_i32, %c0_i32_0 : i32, i32
  }
  func.func @transform_3(%arg0: i32, %arg1: i32) -> (i32, i32, i32) {
    %c0_i32 = arith.constant 0 : i32
    %c0_i32_0 = arith.constant 0 : i32
    return %arg0, %arg1, %c0_i32 : i32, i32, i32
  }
}

</mosaic_0001>

<bundles_post_ra>
// kernel: conv_block_forward.1
= control target key start
LH: loop header
LB: loop body
LE: loop exit
PB: predicated region body
PF: predicated region fallthrough
CT: control target
= control target key end

     0   :  { %s780_s12 = smov 0   ;;  %s782_s13 = smov 0   ;;  %s966_s0 = inlined_call_operand.vmem [shape: f32[2,24,128], index: 0, kind: input, shape index: {}, may-alias: {0,1}]   ;;  %s967_s1 = inlined_call_operand.vmem [shape: f32[2,24,128], index: 1, kind: input, shape index: {}, may-alias: {0,1}]   ;;  %s968_s2 = inlined_call_operand.vmem [shape: f32[384,128], index: 2, kind: input, shape index: {}]   ;;  %s969_s3 = inlined_call_operand.vmem [shape: f32[2,16,128], index: 3, kind: output, shape index: {}]  }
   0x1   :  { %s784_s14 = smov 0  }
   0x2 LB: > { %s25_s15 = sadd.s32 1, %s754_s13  ;;  %p608_p0 = scmp.ge.s32.totalorder %s758_s14, 1  ;;  %s758_s14 = sphi %s784_s14, %s13_s14   ;;  %s754_s13 = sphi %s782_s13, %s971_s13   ;;  %s750_s12 = sphi %s780_s12, %s970_s12  }
   0x3   : > { %p27_p1 = scmp.ge.s32.totalorder %s25_s15, 2  ;;  %p189_p2 = scmp.lt.s32.totalorder %s758_s14, 3 }
   0x5   : > { %s973_s15 = smov (%p27_p1, %s25_s15), 0  ;;  %p190_p3 = pnand %p608_p0, %p189_p2 }
   0x6   : > { %p240_p4 = scmp.lt.s32.totalorder (!%p190_p3), %s750_s12, 1 }
   0x7   : > { %193 = sbr.rel (%p190_p3) target bundleno = 251 (0xfb), region = 32 }
   0xc   : > { %v328_v0 = vld [vmem:[%s968_s2 + $0xf8] sm:$0xff]  ;;  %v327_v2 = vld [vmem:[%s968_s2 + $0xf0] sm:$0xff]  ;;  %v326_v5 = vld [vmem:[%s968_s2 + $0xe8] sm:$0xff]  ;;  %s975_s12 = smov (!%p240_p4, %s750_s12), 1  ;;  %vm281_vm0 = vcmask 1046528   ;;  %vm289_vm1 = vcmask 1045504  }
   0xd   : > { %v312_v1 = vld [vmem:[%s968_s2 + $0x78] sm:$0xff]  ;;  %618 = vmatprep.subr.mxu0 %v328_v0  ;;  %v311_v4 = vld [vmem:[%s968_s2 + $0x70] sm:$0xff]  ;;  %v310_v7 = vld [vmem:[%s968_s2 + $0x68] sm:$0xff]  ;;  %s709_s20 = smul.u32 24, %s975_s12 }
   0xe   : > { %v344_v3 = vld [vmem:[%s968_s2 + $0x178] sm:$0xff]  ;;  %619 = vmatpush3.msra.mxu0 %v312_v1  ;;  %v343_v6 = vld [vmem:[%s968_s2 + $0x170] sm:$0xff]  ;;  %v342_v8 = vld [vmem:[%s968_s2 + $0x168] sm:$0xff] }
   0xf   : > { %674 = vmatprep.subr.mxu1 %v344_v3  ;;  %620 = vmatprep.subr.mxu0 %v327_v2  ;;  %v325_v9 = vld [vmem:[%s968_s2 + $0xe0] sm:$0xff]  ;;  %v324_v12 = vld [vmem:[%s968_s2 + $0xd8] sm:$0xff]  ;;  %v323_v15 = vld [vmem:[%s968_s2 + $0xd0] sm:$0xff]  ;;  %s247_s8 = scalar_lea.vmem %s966_s0, %s709_s20  ;;  %s616_s17 = sadd.s32 16, %s709_s20 }
  0x10   : > { %675 = vmatpush3.msra.mxu1 %v344_v3  ;;  %621 = vmatpush3.msra.mxu0 %v311_v4  ;;  %v309_v10 = vld [vmem:[%s968_s2 + $0x60] sm:$0xff]  ;;  %v308_v13 = vld [vmem:[%s968_s2 + $0x58] sm:$0xff]  ;;  %v307_v16 = vld [vmem:[%s968_s2 + $0x50] sm:$0xff]  ;;  %s262_s28 = scalar_lea.vmem %s967_s1, %s616_s17 }
  0x11   : > { %676 = vmatprep.subr.mxu1 %v343_v6  ;;  %622 = vmatprep.subr.mxu0 %v326_v5  ;;  %v341_v11 = vld [vmem:[%s968_s2 + $0x160] sm:$0xff]  ;;  %v340_v14 = vld [vmem:[%s968_s2 + $0x158] sm:$0xff]  ;;  %v339_v17 = vld [vmem:[%s968_s2 + $0x150] sm:$0xff] }
  0x12   : > { %677 = vmatpush3.msra.mxu1 %v343_v6  ;;  %623 = vmatpush3.msra.mxu0 %v310_v7  ;;  %v322_v18 = vld [vmem:[%s968_s2 + $0xc8] sm:$0xff]  ;;  %v321_v21 = vld [vmem:[%s968_s2 + $0xc0] sm:$0xff]  ;;  %v320_v24 = vld [vmem:[%s968_s2 + $0xb8] sm:$0xff] }
  0x13   : > { %678 = vmatprep.subr.mxu1 %v342_v8  ;;  %624 = vmatprep.subr.mxu0 %v325_v9  ;;  %v306_v19 = vld [vmem:[%s968_s2 + $0x48] sm:$0xff]  ;;  %v305_v22 = vld [vmem:[%s968_s2 + $0x40] sm:$0xff]  ;;  %v304_v25 = vld [vmem:[%s968_s2 + $0x38] sm:$0xff] }
  0x14   : > { %679 = vmatpush3.msra.mxu1 %v342_v8  ;;  %625 = vmatpush3.msra.mxu0 %v309_v10  ;;  %v338_v20 = vld [vmem:[%s968_s2 + $0x148] sm:$0xff]  ;;  %v337_v23 = vld [vmem:[%s968_s2 + $0x140] sm:$0xff]  ;;  %v336_v26 = vld [vmem:[%s968_s2 + $0x138] sm:$0xff] }
  0x15   : > { %680 = vmatprep.subr.mxu1 %v341_v11  ;;  %626 = vmatprep.subr.mxu0 %v324_v12  ;;  %v319_v27 = vld [vmem:[%s968_s2 + $0xb0] sm:$0xff]  ;;  %v318_v30 = vld [vmem:[%s968_s2 + $0xa8] sm:$0xff]  ;;  %v317_v33 = vld [vmem:[%s968_s2 + $0xa0] sm:$0xff] }
  0x16   : > { %681 = vmatpush3.msra.mxu1 %v341_v11  ;;  %627 = vmatpush3.msra.mxu0 %v308_v13  ;;  %v303_v28 = vld [vmem:[%s968_s2 + $0x30] sm:$0xff]  ;;  %v302_v31 = vld [vmem:[%s968_s2 + $0x28] sm:$0xff]  ;;  %v301_v34 = vld [vmem:[%s968_s2 + $0x20] sm:$0xff] }
  0x17   : > { %682 = vmatprep.subr.mxu1 %v340_v14  ;;  %628 = vmatprep.subr.mxu0 %v323_v15  ;;  %v335_v29 = vld [vmem:[%s968_s2 + $0x130] sm:$0xff]  ;;  %v334_v32 = vld [vmem:[%s968_s2 + $0x128] sm:$0xff]  ;;  %v333_v35 = vld [vmem:[%s968_s2 + $0x120] sm:$0xff] }
  0x18   : > { %683 = vmatpush3.msra.mxu1 %v340_v14  ;;  %629 = vmatpush3.msra.mxu0 %v307_v16  ;;  %v275_v36 = vld [vmem:[%s247_s8] sm:$0xff]  ;;  %v276_v37 = vld [vmem:[%s247_s8 + $0x8] sm:$0xff]  ;;  %v316_v38 = vld [vmem:[%s968_s2 + $0x98] sm:$0xff] }
  0x19   : > { %684 = vmatprep.subr.mxu1 %v339_v17  ;;  %630 = vmatprep.subr.mxu0 %v322_v18  ;;  %v300_v39 = vld [vmem:[%s968_s2 + $0x18] sm:$0xff]  ;;  %v315_v41 = vld [vmem:[%s968_s2 + $0x90] sm:$0xff]  ;;  %v282_v42 = vrot.slane %v275_v36, 1  ;;  %v283_v43 = vrot.slane %v276_v37, 1  ;;  %v277_v46 = vld [vmem:[%s262_s28] sm:$0xff]  ;;  %v290_v50 = vrot.slane %v275_v36, 2 }
  0x1a   : > { %685 = vmatpush3.msra.mxu1 %v339_v17  ;;  %631 = vmatpush3.msra.mxu0 %v306_v19  ;;  %v332_v40 = vld [vmem:[%s968_s2 + $0x118] sm:$0xff]  ;;  %v299_v44 = vld [vmem:[%s968_s2 + $0x10] sm:$0xff]  ;;  %v314_v47 = vld [vmem:[%s968_s2 + $0x88] sm:$0xff]  ;;  %v291_v51 = vrot.slane %v276_v37, 2  ;;  %v293_v54 = vrot.slane %v277_v46, 2  ;;  %v285_v55 = vrot.slane %v277_v46, 1 }
  0x1b   : > { %686 = vmatprep.subr.mxu1 %v338_v20  ;;  %632 = vmatprep.subr.mxu0 %v321_v21  ;;  %v331_v45 = vld [vmem:[%s968_s2 + $0x110] sm:$0xff]  ;;  %v298_v48 = vld [vmem:[%s968_s2 + $0x8] sm:$0xff]  ;;  %v313_v52 = vld [vmem:[%s968_s2 + $0x80] sm:$0xff]  ;;  %v284_v53 = vsel %vm281_vm0, %v282_v42, %v283_v43  ;;  %s617_s28 = sshll.u32 %s975_s12, 4 }
  0x1c   : > { %687 = vmatpush3.msra.mxu1 %v338_v20  ;;  %633 = vmatpush3.msra.mxu0 %v305_v22  ;;  %v330_v49 = vld [vmem:[%s968_s2 + $0x108] sm:$0xff]  ;;  %v297_v56 = vld [vmem:[%s968_s2] sm:$0xff]  ;;  %v292_v58 = vsel %vm289_vm1, %v290_v50, %v291_v51  ;;  %v294_v59 = vsel %vm289_vm1, %v291_v51, %v293_v54  ;;  %v286_v60 = vsel %vm281_vm0, %v283_v43, %v285_v55  ;;  %s273_s4 = scalar_lea.vmem %s969_s3, %s617_s28 }
  0x1d   : > { %688 = vmatprep.subr.mxu1 %v337_v23  ;;  %634 = vmatprep.subr.mxu0 %v320_v24  ;;  %v329_v57 = vld [vmem:[%s968_s2 + $0x100] sm:$0xff] }
  0x1e   : > { %689 = vmatpush3.msra.mxu1 %v337_v23  ;;  %635 = vmatpush3.msra.mxu0 %v304_v25 }
  0x1f   : > { %690 = vmatprep.subr.mxu1 %v336_v26  ;;  %636 = vmatprep.subr.mxu0 %v319_v27 }
  0x20   : > { %691 = vmatpush3.msra.mxu1 %v336_v26  ;;  %637 = vmatpush3.msra.mxu0 %v303_v28 }
  0x21   : > { %692 = vmatprep.subr.mxu1 %v335_v29  ;;  %638 = vmatprep.subr.mxu0 %v318_v30 }
  0x22   : > { %693 = vmatpush3.msra.mxu1 %v335_v29  ;;  %639 = vmatpush3.msra.mxu0 %v302_v31 }
  0x23   : > { %694 = vmatprep.subr.mxu1 %v334_v32  ;;  %640 = vmatprep.subr.mxu0 %v317_v33 }
  0x24   : > { %695 = vmatpush3.msra.mxu1 %v334_v32  ;;  %641 = vmatpush3.msra.mxu0 %v301_v34 }
  0x25   : > { %696 = vmatprep.subr.mxu1 %v333_v35  ;;  %642 = vmatprep.subr.mxu0 %v316_v38 }
  0x26   : > { %697 = vmatpush3.msra.mxu1 %v333_v35  ;;  %643 = vmatpush3.msra.mxu0 %v300_v39 }
  0x27   : > { %698 = vmatprep.subr.mxu1 %v332_v40  ;;  %644 = vmatprep.subr.mxu0 %v315_v41 }
  0x28   : > { %699 = vmatpush3.msra.mxu1 %v332_v40  ;;  %645 = vmatpush3.msra.mxu0 %v299_v44 }
  0x29   : > { %700 = vmatprep.subr.mxu1 %v331_v45  ;;  %646 = vmatprep.subr.mxu0 %v314_v47 }
  0x2a   : > { %701 = vmatpush3.msra.mxu1 %v331_v45  ;;  %647 = vmatpush3.msra.mxu0 %v298_v48 }
  0x2b   : > { %702 = vmatprep.subr.mxu1 %v330_v49  ;;  %648 = vmatprep.subr.mxu0 %v313_v52 }
  0x2c   : > { %409 = vmatprep.mubr.f32.mxu0 %v284_v53  ;;  %649 = vmatpush3.msra.mxu0 %v297_v56 }
  0x2d   : > { %703 = vmatpush3.msra.mxu1 %v330_v49  ;;  %410 = vmatmul.mubr.f32.vlgmr.msra.gmra.mxu0 %v275_v36 }
  0x2e   : > { %704 = vmatprep.subr.mxu1 %v329_v57  ;;  %706 = vmatprep.mubr.f32.mxu1 %v292_v58 }
  0x2f   : > { %705 = vmatpush3.msra.mxu1 %v329_v57  ;;  %414 = vmatprep.mubr.f32.mxu0 %v286_v60 }
  0x30   : > { %707 = vmatmul.mubr.f32.vlgmr.msra.gmra.mxu1 %v294_v59 }
  0x31   : > { %415 = vmatmul.mubr.f32.gmra.mxu0 %v276_v37 }
  0xed   : > { %v650_v61 = vpop.f32.mrf.mxu0 }
  0xef   : > { %v651_v62 = vpop.f32.mrf.mxu0 }
  0xf0   : > { %v708_v63 = vpop.f32.mrf.mxu1  ;;  %v652_v0 = vadd.f32 %v651_v62, %v650_v61 }
  0xf1   : > { %v653_v1 = vpop.f32.mrf.mxu0 }
  0xf2   : > { %v486_v2 = vpop.f32.mrf.mxu1 }
  0xf3   : > { %v487_v3 = vadd.f32 %v652_v0, %v486_v2  ;;  %v654_v4 = vpop.f32.mrf.mxu0 }
  0xf4   : > { %v655_v6 = vadd.f32 %v654_v4, %v653_v1 }
  0xf5   : > { %v495_v5 = vmax.f32 %v487_v3, 0.0 }
  0xf6   : > { %v492_v7 = vadd.f32 %v708_v63, %v655_v6 }
  0xf7   : > { %497 = vst [vmem:[%s273_s4] sm:$0xff] %v495_v5 }
  0xf8   : > { %v496_v8 = vmax.f32 %v492_v7, 0.0 }
  0xfa   : > { %498 = vst [vmem:[%s273_s4 + $0x8] sm:$0xff] %v496_v8 }
  0xfb PF: > { %s13_s14 = sadd.s32 1, %s758_s14   ;;  %s970_s12 = smov %s754_s13 }
  0xfc   : > { %p10_p5 = scmp.ge.s32.totalorder %s13_s14, 4   ;;  %s971_s13 = smov %s973_s15 }
  0xfe   :  { %12 = sbr.rel (!%p10_p5) target bundleno = 2 (0x2), region = 65 }

</bundles_post_ra>
